<compile_context>
chip_gen: v7x
topology: tpu7x:2x2x1
jax: 0.10.0
libtpu: 0.0.40
codegen_flags: <defaults>
</compile_context>

<pallas_src>
import functools

import numpy as np
import jax
import jax.numpy as jnp
from jax.experimental import pallas as pl
from jax.experimental.pallas import tpu as pltpu

LANES = 128           # vreg lane width -> pad feature axes to this
SUBLANES = 8          # vreg sublane count -> pad the node axis to this
NEG_SLOPE = 0.2       # GATConv LeakyReLU slope
NEG_BIG = 1e30        # additive-mask magnitude for non-edges


def _round_up(v, m):
    return (v + m - 1) // m * m


def _mxu_dot(a, b):
    """bf16-input / f32-accumulate matmul (same helper used by kernel AND reference)."""
    return jnp.dot(a.astype(jnp.bfloat16), b.astype(jnp.bfloat16),
                   preferred_element_type=jnp.float32)


# ----------------------------- Pallas kernel -------------------------------

def _gat_layer(x, w, acat, bias, mask_add, *, heads, f_out, apply_elu):
    """One dense GATConv (concat=True).

    x        : (N, F_in_pad)       node features (f32)
    w        : (F_in_pad, HF_pad)  linear weight (bf16, zero padded)
    acat     : (HF_pad, 2H)        [att_src | att_dst] block-diagonal (bf16)
    bias     : (1, H*F_out)
    mask_add : (N, N)              0 for edges (incl. self loops), -1e30 otherwise
    """
    wh = _mxu_dot(x, w)                        # (N, HF_pad)
    e = _mxu_dot(wh, acat)                     # (N, 2H): cols [0,H)=e_src, [H,2H)=e_dst
    # One hoisted transpose puts the per-source logits on lanes; each head then only needs
    # a cheap sublane broadcast instead of a per-head cross-lane relayout.
    e_t = e.T                                  # (2H, N)

    outs = []
    for h in range(heads):                     # static, small
        # logit[i, j] = LeakyReLU(e_dst[i] + e_src[j]); additive mask removes non-edges.
        logit = e[:, heads + h:heads + h + 1] + e_t[h:h + 1, :]          # (N, N)
        logit = jnp.where(logit >= 0.0, logit, NEG_SLOPE * logit) + mask_add
        m = jnp.max(logit, axis=-1, keepdims=True)
        p = jnp.exp(logit - m)                 # masked entries underflow to exactly 0
        denom = jnp.sum(p, axis=-1, keepdims=True)
        # Aggregate with unnormalized weights; normalize the (N, F_out) result instead of the
        # (N, N) attention matrix, with the reciprocal on the EUP.
        agg = _mxu_dot(p, wh[:, h * f_out:(h + 1) * f_out])             # (N, F_out)
        outs.append(agg * pl.reciprocal(denom, approx=True))

    out = jnp.concatenate(outs, axis=-1) + bias                          # (N, H*F_out)
    if apply_elu:                                                        # fused F.elu
        out = jnp.where(out > 0.0, out, jnp.exp(out) - 1.0)
    return out


def gat2_kernel(x_ref, w1_ref, a1_ref, b1_ref, w2_ref, a2_ref, b2_ref, adj_ref, out_ref,
                *, heads1, f1, heads2, f2):
    """Fused conv1 -> ELU -> conv2 on the whole (padded) graph in one launch."""
    # Additive neighbor mask, built once and reused by every head of BOTH layers.
    mask_add = (adj_ref[...].astype(jnp.float32) - 1.0) * jnp.float32(NEG_BIG)

    h1 = _gat_layer(x_ref[...], w1_ref[...], a1_ref[...], b1_ref[...], mask_add,
                    heads=heads1, f_out=f1, apply_elu=True)
    out = _gat_layer(h1, w2_ref[...], a2_ref[...], b2_ref[...], mask_add,
                     heads=heads2, f_out=f2, apply_elu=False)

    # Single lane-dense store: zero-pad the (N, H2*F2) result up to the 128-lane out block.
    n, w = out.shape
    pad = out_ref.shape[-1] - w
    out_ref[...] = jnp.concatenate([out, jnp.zeros((n, pad), out.dtype)], axis=-1)


# ------------------------------ wrappers ------------------------------------

def _block_diag_att(att):
    """(H, F) per-head attention vectors -> (H*F, H) block-diagonal matrix."""
    h, f = att.shape
    eye = jnp.eye(h, dtype=att.dtype)
    return (att[:, :, None] * eye[:, None, :]).reshape(h * f, h)


def _pad2d(a, rows, cols):
    return jnp.zeros((rows, cols), a.dtype).at[:a.shape[0], :a.shape[1]].set(a)


@jax.jit
def gat_forward(x_pad, adj_i8, params):
    """x = elu(conv1(x)); x = conv2(x) as one fused Pallas call.

    x_pad  : (N_pad, F_in) f32, node axis already padded to a sublane multiple
    adj_i8 : (N_pad, N_pad) int8, adj[target, source] incl. self loops
    """
    w1, a_src1, a_dst1, b1, w2, a_src2, a_dst2, b2 = params
    n_pad, f_in = x_pad.shape
    heads1, f1 = a_src1.shape
    heads2, f2 = a_src2.shape
    hf1, hf2 = heads1 * f1, heads2 * f2

    # Zero-pad every feature axis to a full 128-lane multiple (lane-dense loads/stores).
    f_in_p = _round_up(f_in, LANES)
    hf1_p = _round_up(hf1, LANES)
    hf2_p = _round_up(hf2, LANES)

    x_p = _pad2d(x_pad, n_pad, f_in_p)                                   # f32 activations
    w1_p = _pad2d(w1, f_in_p, hf1_p).astype(jnp.bfloat16)                # bf16 weights (MXU)
    w2_p = _pad2d(w2, hf1, hf2_p).astype(jnp.bfloat16)
    a1 = jnp.concatenate([_block_diag_att(a_src1), _block_diag_att(a_dst1)], axis=1)
    a2 = jnp.concatenate([_block_diag_att(a_src2), _block_diag_att(a_dst2)], axis=1)
    a1_p = _pad2d(a1, hf1_p, 2 * heads1).astype(jnp.bfloat16)            # (hf1_p, 2*H1)
    a2_p = _pad2d(a2, hf2_p, 2 * heads2).astype(jnp.bfloat16)            # (hf2_p, 2*H2)
    b1_r = b1.reshape(1, hf1).astype(jnp.float32)
    b2_r = b2.reshape(1, hf2).astype(jnp.float32)

    kernel = functools.partial(gat2_kernel, heads1=heads1, f1=f1, heads2=heads2, f2=f2)

    def full_spec(shape):
        return pl.BlockSpec(shape, lambda i: (0, 0))

    out = pl.pallas_call(
        kernel,
        out_shape=jax.ShapeDtypeStruct((n_pad, hf2_p), jnp.float32),
        grid=(1,),
        in_specs=[
            full_spec((n_pad, f_in_p)),       # x
            full_spec((f_in_p, hf1_p)),       # W1
            full_spec((hf1_p, 2 * heads1)),   # [att_src1 | att_dst1] block-diag
            full_spec((1, hf1)),              # bias1
            full_spec((hf1, hf2_p)),          # W2
            full_spec((hf2_p, 2 * heads2)),   # [att_src2 | att_dst2] block-diag
            full_spec((1, hf2)),              # bias2
            full_spec((n_pad, n_pad)),        # int8 adjacency (target, source)
        ],
        out_specs=full_spec((n_pad, hf2_p)),
        compiler_params=pltpu.CompilerParams(dimension_semantics=("arbitrary",)),
    )(x_p, w1_p, a1_p, b1_r, w2_p, a2_p, b2_r, adj_i8)
    return out[:, :hf2]


# ------------------------- pure-JAX reference --------------------------------

def gat_conv_ref(x, weight, att_src, att_dst, bias, adj, heads, f_out, apply_elu):
    """Dense GATConv reference on unpadded arrays (same bf16 matmul casts, exact division)."""
    wh = _mxu_dot(x, weight)                                             # (N, H*F)
    acat = jnp.concatenate([_block_diag_att(att_src), _block_diag_att(att_dst)], axis=1)
    e = _mxu_dot(wh, acat)                                               # (N, 2H)
    mask_add = (adj.astype(jnp.float32) - 1.0) * NEG_BIG
    outs = []
    for h in range(heads):
        logit = e[:, heads + h:heads + h + 1] + e[:, h][None, :]
        logit = jnp.where(logit >= 0.0, logit, NEG_SLOPE * logit) + mask_add
        p = jnp.exp(logit - jnp.max(logit, axis=-1, keepdims=True))
        agg = _mxu_dot(p, wh[:, h * f_out:(h + 1) * f_out])
        outs.append(agg / jnp.sum(p, axis=-1, keepdims=True))
    out = jnp.concatenate(outs, axis=-1) + bias.reshape(1, -1)
    if apply_elu:
        out = jnp.where(out > 0.0, out, jnp.exp(out) - 1.0)
    return out


# --------------------------------- main ---------------------------------------

def _glorot(key, shape):
    limit = float(np.sqrt(6.0 / (shape[0] + shape[-1])))
    return jax.random.uniform(key, shape, jnp.float32, -limit, limit)


if __name__ == "__main__":
    # Graph from the original script: m=3, n=4 -> 7 nodes, 12 edges.
    m_, n_ = 3, 4
    num_nodes = m_ + n_                                    # 7
    edge_index = np.array([[0, 0, 0, 0, 1, 1, 1, 1, 2, 2, 2, 2],
                           [0, 1, 2, 3, 0, 1, 2, 3, 0, 1, 2, 3]])

    in_channels, hidden_channels, out_channels = 8, 8, 4
    heads1, heads2 = 4, 2

    key = jax.random.PRNGKey(0)
    ks = jax.random.split(key, 8)
    x = jax.random.normal(ks[0], (num_nodes, in_channels), jnp.float32)
    # TODO(synk): edge_attr / edge_weight is ignored by PyG GATConv (no edge_dim); kept for parity.
    edge_attr = jnp.zeros((edge_index.shape[1],), jnp.float32)

    # conv1: GATConv(in_channels, hidden_channels, heads=4), concat=True
    w1 = _glorot(ks[1], (in_channels, heads1 * hidden_channels))
    a_src1 = _glorot(ks[2], (heads1, hidden_channels))
    a_dst1 = _glorot(ks[3], (heads1, hidden_channels))
    b1 = jnp.zeros((heads1 * hidden_channels,), jnp.float32)
    # conv2: input dim = heads1*hidden_channels (concat output of conv1)
    in2 = heads1 * hidden_channels
    w2 = _glorot(ks[4], (in2, heads2 * out_channels))
    a_src2 = _glorot(ks[5], (heads2, out_channels))
    a_dst2 = _glorot(ks[6], (heads2, out_channels))
    b2 = jnp.zeros((heads2 * out_channels,), jnp.float32)

    # Pad node count to a sublane multiple (7 -> 8); int8 adjacency adj[target, source]
    # with self-loops on ALL rows (keeps padded rows finite so they cannot poison layer 2).
    n_pad = _round_up(num_nodes, SUBLANES)
    x_pad = _pad2d(x, n_pad, in_channels)
    adj_np = np.zeros((n_pad, n_pad), np.int8)
    adj_np[edge_index[1], edge_index[0]] = 1               # adj[target, source]
    np.fill_diagonal(adj_np, 1)                            # self-loops (GATConv default)
    adj = jnp.asarray(adj_np)

    params = (w1, a_src1, a_dst1, b1, w2, a_src2, a_dst2, b2)
    out_pad = gat_forward(x_pad, adj, params)
    out = out_pad[:num_nodes]                              # (7, heads2*out_channels) = (7, 8)
    jax.block_until_ready(out)

    # Cross-check against a pure-JAX reference on the UNPADDED graph. Tolerance covers the
    # in-kernel EUP approximate reciprocal and bf16 rounding differences between the padded
    # and unpadded bf16 matmul paths across the two chained layers.
    adj_u = adj[:num_nodes, :num_nodes]
    h_ref = gat_conv_ref(x, w1, a_src1, a_dst1, b1, adj_u, heads1, hidden_channels, True)
    ref = gat_conv_ref(h_ref, w2, a_src2, a_dst2, b2, adj_u, heads2, out_channels, False)
    np.testing.assert_allclose(np.asarray(out), np.asarray(ref), rtol=2e-2, atol=2e-2)

    print("KERNEL_OK")
</pallas_src>

<mosaic_0001>
module attributes {stable_mosaic.version = 11 : i64} {
  func.func @gat2_kernel(%arg0: i32, %arg1: memref<8x128xf32, #tpu.memory_space<vmem>>, %arg2: memref<128x128xbf16, #tpu.memory_space<vmem>>, %arg3: memref<128x8xbf16, #tpu.memory_space<vmem>>, %arg4: memref<1x32xf32, #tpu.memory_space<vmem>>, %arg5: memref<32x128xbf16, #tpu.memory_space<vmem>>, %arg6: memref<128x4xbf16, #tpu.memory_space<vmem>>, %arg7: memref<1x8xf32, #tpu.memory_space<vmem>>, %arg8: memref<8x8xi8, #tpu.memory_space<vmem>>, %arg9: memref<8x128xf32, #tpu.memory_space<vmem>>) attributes {dimension_semantics = [#tpu.dimension_semantics<arbitrary>], iteration_bounds = array<i64: 1>, scalar_prefetch = 0 : i64, scratch_operands = 0 : i64, tpu.core_type = #tpu.core_type<tc>, window_params = [{pipeline_mode = #tpu.pipeline_mode<synchronous>, transform_indices = @transform_0, window_bounds = array<i64: 8, 128>}, {pipeline_mode = #tpu.pipeline_mode<synchronous>, transform_indices = @transform_1, window_bounds = array<i64: 128, 128>}, {pipeline_mode = #tpu.pipeline_mode<synchronous>, transform_indices = @transform_2, window_bounds = array<i64: 128, 8>}, {pipeline_mode = #tpu.pipeline_mode<synchronous>, transform_indices = @transform_3, window_bounds = array<i64: 1, 32>}, {pipeline_mode = #tpu.pipeline_mode<synchronous>, transform_indices = @transform_4, window_bounds = array<i64: 32, 128>}, {pipeline_mode = #tpu.pipeline_mode<synchronous>, transform_indices = @transform_5, window_bounds = array<i64: 128, 4>}, {pipeline_mode = #tpu.pipeline_mode<synchronous>, transform_indices = @transform_6, window_bounds = array<i64: 1, 8>}, {pipeline_mode = #tpu.pipeline_mode<synchronous>, transform_indices = @transform_7, window_bounds = array<i64: 8, 8>}, {pipeline_mode = #tpu.pipeline_mode<synchronous>, transform_indices = @transform_8, window_bounds = array<i64: 8, 128>}]} {
    %c0 = arith.constant 0 : index
    %c0_0 = arith.constant 0 : index
    %0 = vector.load %arg8[%c0, %c0_0] : memref<8x8xi8, #tpu.memory_space<vmem>>, vector<8x8xi8>
    %1 = arith.sitofp %0 : vector<8x8xi8> to vector<8x8xf32>
    %cst = arith.constant 1.000000e+00 : f32
    %2 = vector.broadcast %cst : f32 to vector<8x8xf32>
    %3 = arith.subf %1, %2 : vector<8x8xf32>
    %cst_1 = arith.constant 1.000000e+30 : f32
    %4 = vector.broadcast %cst_1 : f32 to vector<8x8xf32>
    %5 = arith.mulf %3, %4 : vector<8x8xf32>
    %c0_2 = arith.constant 0 : index
    %c0_3 = arith.constant 0 : index
    %6 = vector.load %arg1[%c0_2, %c0_3] : memref<8x128xf32, #tpu.memory_space<vmem>>, vector<8x128xf32>
    %c0_4 = arith.constant 0 : index
    %c0_5 = arith.constant 0 : index
    %7 = vector.load %arg2[%c0_4, %c0_5] : memref<128x128xbf16, #tpu.memory_space<vmem>>, vector<128x128xbf16>
    %c0_6 = arith.constant 0 : index
    %c0_7 = arith.constant 0 : index
    %8 = vector.load %arg3[%c0_6, %c0_7] : memref<128x8xbf16, #tpu.memory_space<vmem>>, vector<128x8xbf16>
    %c0_8 = arith.constant 0 : index
    %c0_9 = arith.constant 0 : index
    %9 = vector.load %arg4[%c0_8, %c0_9] : memref<1x32xf32, #tpu.memory_space<vmem>>, vector<1x32xf32>
    %10 = arith.truncf %6 : vector<8x128xf32> to vector<8x128xbf16>
    %cst_10 = arith.constant dense<0.000000e+00> : vector<8x128xf32>
    %11 = tpu.matmul %10, %7, %cst_10 {dimension_numbers = #tpu.dot_dimension_numbers<[1], [0], [0], [1], [0, 0, 1, 1], [], []>} : vector<8x128xbf16>, vector<128x128xbf16>, vector<8x128xf32> -> vector<8x128xf32>
    %12 = arith.truncf %11 : vector<8x128xf32> to vector<8x128xbf16>
    %cst_11 = arith.constant dense<0.000000e+00> : vector<8x8xf32>
    %13 = tpu.matmul %12, %8, %cst_11 {dimension_numbers = #tpu.dot_dimension_numbers<[1], [0], [0], [1], [0, 0, 1, 1], [], []>} : vector<8x128xbf16>, vector<128x8xbf16>, vector<8x8xf32> -> vector<8x8xf32>
    %14 = tpu.transpose %13, [1, 0] : vector<8x8xf32> -> vector<8x8xf32>
    %15 = vector.extract_strided_slice %13 {offsets = [0, 4], sizes = [8, 1], strides = [1, 1]} : vector<8x8xf32> to vector<8x1xf32>
    %16 = vector.extract_strided_slice %14 {offsets = [0, 0], sizes = [1, 8], strides = [1, 1]} : vector<8x8xf32> to vector<1x8xf32>
    %17 = vector.broadcast %15 : vector<8x1xf32> to vector<8x8xf32>
    %18 = vector.broadcast %16 : vector<1x8xf32> to vector<8x8xf32>
    %19 = arith.addf %17, %18 : vector<8x8xf32>
    %cst_12 = arith.constant 0.000000e+00 : f32
    %20 = vector.broadcast %cst_12 : f32 to vector<8x8xf32>
    %21 = arith.cmpf oge, %19, %20 : vector<8x8xf32>
    %cst_13 = arith.constant 2.000000e-01 : f32
    %22 = vector.broadcast %cst_13 : f32 to vector<8x8xf32>
    %23 = arith.mulf %22, %19 : vector<8x8xf32>
    %24 = arith.select %21, %19, %23 : vector<8x8xi1>, vector<8x8xf32>
    %25 = arith.addf %24, %5 : vector<8x8xf32>
    %cst_14 = arith.constant dense<0xFF800000> : vector<8xf32>
    %26 = vector.multi_reduction <maximumf>, %25, %cst_14 [1] : vector<8x8xf32> to vector<8xf32>
    %27 = vector.shape_cast %26 : vector<8xf32> to vector<8x1xf32>
    %28 = vector.broadcast %27 : vector<8x1xf32> to vector<8x8xf32>
    %29 = arith.subf %25, %28 : vector<8x8xf32>
    %30 = math.exp %29 : vector<8x8xf32>
    %cst_15 = arith.constant dense<0.000000e+00> : vector<8xf32>
    %31 = vector.multi_reduction <add>, %30, %cst_15 [1] : vector<8x8xf32> to vector<8xf32>
    %32 = vector.shape_cast %31 : vector<8xf32> to vector<8x1xf32>
    %33 = vector.extract_strided_slice %11 {offsets = [0, 0], sizes = [8, 8], strides = [1, 1]} : vector<8x128xf32> to vector<8x8xf32>
    %34 = arith.truncf %30 : vector<8x8xf32> to vector<8x8xbf16>
    %35 = arith.truncf %33 : vector<8x8xf32> to vector<8x8xbf16>
    %cst_16 = arith.constant dense<0.000000e+00> : vector<8x8xf32>
    %36 = tpu.matmul %34, %35, %cst_16 {dimension_numbers = #tpu.dot_dimension_numbers<[1], [0], [0], [1], [0, 0, 1, 1], [], []>} : vector<8x8xbf16>, vector<8x8xbf16>, vector<8x8xf32> -> vector<8x8xf32>
    %37 = tpu.reciprocal %32 {approx = true} : vector<8x1xf32> -> vector<8x1xf32>
    %38 = vector.broadcast %37 : vector<8x1xf32> to vector<8x8xf32>
    %39 = arith.mulf %36, %38 : vector<8x8xf32>
    %40 = vector.extract_strided_slice %13 {offsets = [0, 5], sizes = [8, 1], strides = [1, 1]} : vector<8x8xf32> to vector<8x1xf32>
    %41 = vector.extract_strided_slice %14 {offsets = [1, 0], sizes = [1, 8], strides = [1, 1]} : vector<8x8xf32> to vector<1x8xf32>
    %42 = vector.broadcast %40 : vector<8x1xf32> to vector<8x8xf32>
    %43 = vector.broadcast %41 : vector<1x8xf32> to vector<8x8xf32>
    %44 = arith.addf %42, %43 : vector<8x8xf32>
    %cst_17 = arith.constant 0.000000e+00 : f32
    %45 = vector.broadcast %cst_17 : f32 to vector<8x8xf32>
    %46 = arith.cmpf oge, %44, %45 : vector<8x8xf32>
    %cst_18 = arith.constant 2.000000e-01 : f32
    %47 = vector.broadcast %cst_18 : f32 to vector<8x8xf32>
    %48 = arith.mulf %47, %44 : vector<8x8xf32>
    %49 = arith.select %46, %44, %48 : vector<8x8xi1>, vector<8x8xf32>
    %50 = arith.addf %49, %5 : vector<8x8xf32>
    %cst_19 = arith.constant dense<0xFF800000> : vector<8xf32>
    %51 = vector.multi_reduction <maximumf>, %50, %cst_19 [1] : vector<8x8xf32> to vector<8xf32>
    %52 = vector.shape_cast %51 : vector<8xf32> to vector<8x1xf32>
    %53 = vector.broadcast %52 : vector<8x1xf32> to vector<8x8xf32>
    %54 = arith.subf %50, %53 : vector<8x8xf32>
    %55 = math.exp %54 : vector<8x8xf32>
    %cst_20 = arith.constant dense<0.000000e+00> : vector<8xf32>
    %56 = vector.multi_reduction <add>, %55, %cst_20 [1] : vector<8x8xf32> to vector<8xf32>
    %57 = vector.shape_cast %56 : vector<8xf32> to vector<8x1xf32>
    %58 = vector.extract_strided_slice %11 {offsets = [0, 8], sizes = [8, 8], strides = [1, 1]} : vector<8x128xf32> to vector<8x8xf32>
    %59 = arith.truncf %55 : vector<8x8xf32> to vector<8x8xbf16>
    %60 = arith.truncf %58 : vector<8x8xf32> to vector<8x8xbf16>
    %cst_21 = arith.constant dense<0.000000e+00> : vector<8x8xf32>
    %61 = tpu.matmul %59, %60, %cst_21 {dimension_numbers = #tpu.dot_dimension_numbers<[1], [0], [0], [1], [0, 0, 1, 1], [], []>} : vector<8x8xbf16>, vector<8x8xbf16>, vector<8x8xf32> -> vector<8x8xf32>
    %62 = tpu.reciprocal %57 {approx = true} : vector<8x1xf32> -> vector<8x1xf32>
    %63 = vector.broadcast %62 : vector<8x1xf32> to vector<8x8xf32>
    %64 = arith.mulf %61, %63 : vector<8x8xf32>
    %65 = vector.extract_strided_slice %13 {offsets = [0, 6], sizes = [8, 1], strides = [1, 1]} : vector<8x8xf32> to vector<8x1xf32>
    %66 = vector.extract_strided_slice %14 {offsets = [2, 0], sizes = [1, 8], strides = [1, 1]} : vector<8x8xf32> to vector<1x8xf32>
    %67 = vector.broadcast %65 : vector<8x1xf32> to vector<8x8xf32>
    %68 = vector.broadcast %66 : vector<1x8xf32> to vector<8x8xf32>
    %69 = arith.addf %67, %68 : vector<8x8xf32>
    %cst_22 = arith.constant 0.000000e+00 : f32
    %70 = vector.broadcast %cst_22 : f32 to vector<8x8xf32>
    %71 = arith.cmpf oge, %69, %70 : vector<8x8xf32>
    %cst_23 = arith.constant 2.000000e-01 : f32
    %72 = vector.broadcast %cst_23 : f32 to vector<8x8xf32>
    %73 = arith.mulf %72, %69 : vector<8x8xf32>
    %74 = arith.select %71, %69, %73 : vector<8x8xi1>, vector<8x8xf32>
    %75 = arith.addf %74, %5 : vector<8x8xf32>
    %cst_24 = arith.constant dense<0xFF800000> : vector<8xf32>
    %76 = vector.multi_reduction <maximumf>, %75, %cst_24 [1] : vector<8x8xf32> to vector<8xf32>
    %77 = vector.shape_cast %76 : vector<8xf32> to vector<8x1xf32>
    %78 = vector.broadcast %77 : vector<8x1xf32> to vector<8x8xf32>
    %79 = arith.subf %75, %78 : vector<8x8xf32>
    %80 = math.exp %79 : vector<8x8xf32>
    %cst_25 = arith.constant dense<0.000000e+00> : vector<8xf32>
    %81 = vector.multi_reduction <add>, %80, %cst_25 [1] : vector<8x8xf32> to vector<8xf32>
    %82 = vector.shape_cast %81 : vector<8xf32> to vector<8x1xf32>
    %83 = vector.extract_strided_slice %11 {offsets = [0, 16], sizes = [8, 8], strides = [1, 1]} : vector<8x128xf32> to vector<8x8xf32>
    %84 = arith.truncf %80 : vector<8x8xf32> to vector<8x8xbf16>
    %85 = arith.truncf %83 : vector<8x8xf32> to vector<8x8xbf16>
    %cst_26 = arith.constant dense<0.000000e+00> : vector<8x8xf32>
    %86 = tpu.matmul %84, %85, %cst_26 {dimension_numbers = #tpu.dot_dimension_numbers<[1], [0], [0], [1], [0, 0, 1, 1], [], []>} : vector<8x8xbf16>, vector<8x8xbf16>, vector<8x8xf32> -> vector<8x8xf32>
    %87 = tpu.reciprocal %82 {approx = true} : vector<8x1xf32> -> vector<8x1xf32>
    %88 = vector.broadcast %87 : vector<8x1xf32> to vector<8x8xf32>
    %89 = arith.mulf %86, %88 : vector<8x8xf32>
    %90 = vector.extract_strided_slice %13 {offsets = [0, 7], sizes = [8, 1], strides = [1, 1]} : vector<8x8xf32> to vector<8x1xf32>
    %91 = vector.extract_strided_slice %14 {offsets = [3, 0], sizes = [1, 8], strides = [1, 1]} : vector<8x8xf32> to vector<1x8xf32>
    %92 = vector.broadcast %90 : vector<8x1xf32> to vector<8x8xf32>
    %93 = vector.broadcast %91 : vector<1x8xf32> to vector<8x8xf32>
    %94 = arith.addf %92, %93 : vector<8x8xf32>
    %cst_27 = arith.constant 0.000000e+00 : f32
    %95 = vector.broadcast %cst_27 : f32 to vector<8x8xf32>
    %96 = arith.cmpf oge, %94, %95 : vector<8x8xf32>
    %cst_28 = arith.constant 2.000000e-01 : f32
    %97 = vector.broadcast %cst_28 : f32 to vector<8x8xf32>
    %98 = arith.mulf %97, %94 : vector<8x8xf32>
    %99 = arith.select %96, %94, %98 : vector<8x8xi1>, vector<8x8xf32>
    %100 = arith.addf %99, %5 : vector<8x8xf32>
    %cst_29 = arith.constant dense<0xFF800000> : vector<8xf32>
    %101 = vector.multi_reduction <maximumf>, %100, %cst_29 [1] : vector<8x8xf32> to vector<8xf32>
    %102 = vector.shape_cast %101 : vector<8xf32> to vector<8x1xf32>
    %103 = vector.broadcast %102 : vector<8x1xf32> to vector<8x8xf32>
    %104 = arith.subf %100, %103 : vector<8x8xf32>
    %105 = math.exp %104 : vector<8x8xf32>
    %cst_30 = arith.constant dense<0.000000e+00> : vector<8xf32>
    %106 = vector.multi_reduction <add>, %105, %cst_30 [1] : vector<8x8xf32> to vector<8xf32>
    %107 = vector.shape_cast %106 : vector<8xf32> to vector<8x1xf32>
    %108 = vector.extract_strided_slice %11 {offsets = [0, 24], sizes = [8, 8], strides = [1, 1]} : vector<8x128xf32> to vector<8x8xf32>
    %109 = arith.truncf %105 : vector<8x8xf32> to vector<8x8xbf16>
    %110 = arith.truncf %108 : vector<8x8xf32> to vector<8x8xbf16>
    %cst_31 = arith.constant dense<0.000000e+00> : vector<8x8xf32>
    %111 = tpu.matmul %109, %110, %cst_31 {dimension_numbers = #tpu.dot_dimension_numbers<[1], [0], [0], [1], [0, 0, 1, 1], [], []>} : vector<8x8xbf16>, vector<8x8xbf16>, vector<8x8xf32> -> vector<8x8xf32>
    %112 = tpu.reciprocal %107 {approx = true} : vector<8x1xf32> -> vector<8x1xf32>
    %113 = vector.broadcast %112 : vector<8x1xf32> to vector<8x8xf32>
    %114 = arith.mulf %111, %113 : vector<8x8xf32>
    %115 = tpu.concatenate %39, %64, %89, %114 in 1 : vector<8x8xf32>, vector<8x8xf32>, vector<8x8xf32>, vector<8x8xf32> -> vector<8x32xf32>
    %116 = vector.broadcast %9 : vector<1x32xf32> to vector<8x32xf32>
    %117 = arith.addf %115, %116 : vector<8x32xf32>
    %cst_32 = arith.constant 0.000000e+00 : f32
    %118 = vector.broadcast %cst_32 : f32 to vector<8x32xf32>
    %119 = arith.cmpf ogt, %117, %118 : vector<8x32xf32>
    %120 = math.exp %117 : vector<8x32xf32>
    %cst_33 = arith.constant 1.000000e+00 : f32
    %121 = vector.broadcast %cst_33 : f32 to vector<8x32xf32>
    %122 = arith.subf %120, %121 : vector<8x32xf32>
    %123 = arith.select %119, %117, %122 : vector<8x32xi1>, vector<8x32xf32>
    %c0_34 = arith.constant 0 : index
    %c0_35 = arith.constant 0 : index
    %124 = vector.load %arg5[%c0_34, %c0_35] : memref<32x128xbf16, #tpu.memory_space<vmem>>, vector<32x128xbf16>
    %c0_36 = arith.constant 0 : index
    %c0_37 = arith.constant 0 : index
    %125 = vector.load %arg6[%c0_36, %c0_37] : memref<128x4xbf16, #tpu.memory_space<vmem>>, vector<128x4xbf16>
    %c0_38 = arith.constant 0 : index
    %c0_39 = arith.constant 0 : index
    %126 = vector.load %arg7[%c0_38, %c0_39] : memref<1x8xf32, #tpu.memory_space<vmem>>, vector<1x8xf32>
    %127 = arith.truncf %123 : vector<8x32xf32> to vector<8x32xbf16>
    %cst_40 = arith.constant dense<0.000000e+00> : vector<8x128xf32>
    %128 = tpu.matmul %127, %124, %cst_40 {dimension_numbers = #tpu.dot_dimension_numbers<[1], [0], [0], [1], [0, 0, 1, 1], [], []>} : vector<8x32xbf16>, vector<32x128xbf16>, vector<8x128xf32> -> vector<8x128xf32>
    %129 = arith.truncf %128 : vector<8x128xf32> to vector<8x128xbf16>
    %cst_41 = arith.constant dense<0.000000e+00> : vector<8x4xf32>
    %130 = tpu.matmul %129, %125, %cst_41 {dimension_numbers = #tpu.dot_dimension_numbers<[1], [0], [0], [1], [0, 0, 1, 1], [], []>} : vector<8x128xbf16>, vector<128x4xbf16>, vector<8x4xf32> -> vector<8x4xf32>
    %131 = tpu.transpose %130, [1, 0] : vector<8x4xf32> -> vector<4x8xf32>
    %132 = vector.extract_strided_slice %130 {offsets = [0, 2], sizes = [8, 1], strides = [1, 1]} : vector<8x4xf32> to vector<8x1xf32>
    %133 = vector.extract_strided_slice %131 {offsets = [0, 0], sizes = [1, 8], strides = [1, 1]} : vector<4x8xf32> to vector<1x8xf32>
    %134 = vector.broadcast %132 : vector<8x1xf32> to vector<8x8xf32>
    %135 = vector.broadcast %133 : vector<1x8xf32> to vector<8x8xf32>
    %136 = arith.addf %134, %135 : vector<8x8xf32>
    %cst_42 = arith.constant 0.000000e+00 : f32
    %137 = vector.broadcast %cst_42 : f32 to vector<8x8xf32>
    %138 = arith.cmpf oge, %136, %137 : vector<8x8xf32>
    %cst_43 = arith.constant 2.000000e-01 : f32
    %139 = vector.broadcast %cst_43 : f32 to vector<8x8xf32>
    %140 = arith.mulf %139, %136 : vector<8x8xf32>
    %141 = arith.select %138, %136, %140 : vector<8x8xi1>, vector<8x8xf32>
    %142 = arith.addf %141, %5 : vector<8x8xf32>
    %cst_44 = arith.constant dense<0xFF800000> : vector<8xf32>
    %143 = vector.multi_reduction <maximumf>, %142, %cst_44 [1] : vector<8x8xf32> to vector<8xf32>
    %144 = vector.shape_cast %143 : vector<8xf32> to vector<8x1xf32>
    %145 = vector.broadcast %144 : vector<8x1xf32> to vector<8x8xf32>
    %146 = arith.subf %142, %145 : vector<8x8xf32>
    %147 = math.exp %146 : vector<8x8xf32>
    %cst_45 = arith.constant dense<0.000000e+00> : vector<8xf32>
    %148 = vector.multi_reduction <add>, %147, %cst_45 [1] : vector<8x8xf32> to vector<8xf32>
    %149 = vector.shape_cast %148 : vector<8xf32> to vector<8x1xf32>
    %150 = vector.extract_strided_slice %128 {offsets = [0, 0], sizes = [8, 4], strides = [1, 1]} : vector<8x128xf32> to vector<8x4xf32>
    %151 = arith.truncf %147 : vector<8x8xf32> to vector<8x8xbf16>
    %152 = arith.truncf %150 : vector<8x4xf32> to vector<8x4xbf16>
    %cst_46 = arith.constant dense<0.000000e+00> : vector<8x4xf32>
    %153 = tpu.matmul %151, %152, %cst_46 {dimension_numbers = #tpu.dot_dimension_numbers<[1], [0], [0], [1], [0, 0, 1, 1], [], []>} : vector<8x8xbf16>, vector<8x4xbf16>, vector<8x4xf32> -> vector<8x4xf32>
    %154 = tpu.reciprocal %149 {approx = true} : vector<8x1xf32> -> vector<8x1xf32>
    %155 = vector.broadcast %154 : vector<8x1xf32> to vector<8x4xf32>
    %156 = arith.mulf %153, %155 : vector<8x4xf32>
    %157 = vector.extract_strided_slice %130 {offsets = [0, 3], sizes = [8, 1], strides = [1, 1]} : vector<8x4xf32> to vector<8x1xf32>
    %158 = vector.extract_strided_slice %131 {offsets = [1, 0], sizes = [1, 8], strides = [1, 1]} : vector<4x8xf32> to vector<1x8xf32>
    %159 = vector.broadcast %157 : vector<8x1xf32> to vector<8x8xf32>
    %160 = vector.broadcast %158 : vector<1x8xf32> to vector<8x8xf32>
    %161 = arith.addf %159, %160 : vector<8x8xf32>
    %cst_47 = arith.constant 0.000000e+00 : f32
    %162 = vector.broadcast %cst_47 : f32 to vector<8x8xf32>
    %163 = arith.cmpf oge, %161, %162 : vector<8x8xf32>
    %cst_48 = arith.constant 2.000000e-01 : f32
    %164 = vector.broadcast %cst_48 : f32 to vector<8x8xf32>
    %165 = arith.mulf %164, %161 : vector<8x8xf32>
    %166 = arith.select %163, %161, %165 : vector<8x8xi1>, vector<8x8xf32>
    %167 = arith.addf %166, %5 : vector<8x8xf32>
    %cst_49 = arith.constant dense<0xFF800000> : vector<8xf32>
    %168 = vector.multi_reduction <maximumf>, %167, %cst_49 [1] : vector<8x8xf32> to vector<8xf32>
    %169 = vector.shape_cast %168 : vector<8xf32> to vector<8x1xf32>
    %170 = vector.broadcast %169 : vector<8x1xf32> to vector<8x8xf32>
    %171 = arith.subf %167, %170 : vector<8x8xf32>
    %172 = math.exp %171 : vector<8x8xf32>
    %cst_50 = arith.constant dense<0.000000e+00> : vector<8xf32>
    %173 = vector.multi_reduction <add>, %172, %cst_50 [1] : vector<8x8xf32> to vector<8xf32>
    %174 = vector.shape_cast %173 : vector<8xf32> to vector<8x1xf32>
    %175 = vector.extract_strided_slice %128 {offsets = [0, 4], sizes = [8, 4], strides = [1, 1]} : vector<8x128xf32> to vector<8x4xf32>
    %176 = arith.truncf %172 : vector<8x8xf32> to vector<8x8xbf16>
    %177 = arith.truncf %175 : vector<8x4xf32> to vector<8x4xbf16>
    %cst_51 = arith.constant dense<0.000000e+00> : vector<8x4xf32>
    %178 = tpu.matmul %176, %177, %cst_51 {dimension_numbers = #tpu.dot_dimension_numbers<[1], [0], [0], [1], [0, 0, 1, 1], [], []>} : vector<8x8xbf16>, vector<8x4xbf16>, vector<8x4xf32> -> vector<8x4xf32>
    %179 = tpu.reciprocal %174 {approx = true} : vector<8x1xf32> -> vector<8x1xf32>
    %180 = vector.broadcast %179 : vector<8x1xf32> to vector<8x4xf32>
    %181 = arith.mulf %178, %180 : vector<8x4xf32>
    %182 = tpu.concatenate %156, %181 in 1 : vector<8x4xf32>, vector<8x4xf32> -> vector<8x8xf32>
    %183 = vector.broadcast %126 : vector<1x8xf32> to vector<8x8xf32>
    %184 = arith.addf %182, %183 : vector<8x8xf32>
    %cst_52 = arith.constant 0.000000e+00 : f32
    %185 = vector.broadcast %cst_52 : f32 to vector<8x120xf32>
    %186 = tpu.concatenate %184, %185 in 1 : vector<8x8xf32>, vector<8x120xf32> -> vector<8x128xf32>
    %c0_53 = arith.constant 0 : index
    %c0_54 = arith.constant 0 : index
    %187 = vector.load %arg9[%c0_53, %c0_54] : memref<8x128xf32, #tpu.memory_space<vmem>>, vector<8x128xf32>
    tpu.vector_store %arg9[%c0_53, %c0_54], %186 {strides = array<i32>} : memref<8x128xf32, #tpu.memory_space<vmem>>, vector<8x128xf32>,
    return
  }
  func.func @transform_0(%arg0: i32) -> (i32, i32) {
    %c0_i32 = arith.constant 0 : i32
    %c0_i32_0 = arith.constant 0 : i32
    %c0_i32_1 = arith.constant 0 : i32
    return %c0_i32, %c0_i32_0 : i32, i32
  }
  func.func @transform_1(%arg0: i32) -> (i32, i32) {
    %c0_i32 = arith.constant 0 : i32
    %c0_i32_0 = arith.constant 0 : i32
    %c0_i32_1 = arith.constant 0 : i32
    return %c0_i32, %c0_i32_0 : i32, i32
  }
  func.func @transform_2(%arg0: i32) -> (i32, i32) {
    %c0_i32 = arith.constant 0 : i32
    %c0_i32_0 = arith.constant 0 : i32
    %c0_i32_1 = arith.constant 0 : i32
    return %c0_i32, %c0_i32_0 : i32, i32
  }
  func.func @transform_3(%arg0: i32) -> (i32, i32) {
    %c0_i32 = arith.constant 0 : i32
    %c0_i32_0 = arith.constant 0 : i32
    %c0_i32_1 = arith.constant 0 : i32
    return %c0_i32, %c0_i32_0 : i32, i32
  }
  func.func @transform_4(%arg0: i32) -> (i32, i32) {
    %c0_i32 = arith.constant 0 : i32
    %c0_i32_0 = arith.constant 0 : i32
    %c0_i32_1 = arith.constant 0 : i32
    return %c0_i32, %c0_i32_0 : i32, i32
  }
  func.func @transform_5(%arg0: i32) -> (i32, i32) {
    %c0_i32 = arith.constant 0 : i32
    %c0_i32_0 = arith.constant 0 : i32
    %c0_i32_1 = arith.constant 0 : i32
    return %c0_i32, %c0_i32_0 : i32, i32
  }
  func.func @transform_6(%arg0: i32) -> (i32, i32) {
    %c0_i32 = arith.constant 0 : i32
    %c0_i32_0 = arith.constant 0 : i32
    %c0_i32_1 = arith.constant 0 : i32
    return %c0_i32, %c0_i32_0 : i32, i32
  }
  func.func @transform_7(%arg0: i32) -> (i32, i32) {
    %c0_i32 = arith.constant 0 : i32
    %c0_i32_0 = arith.constant 0 : i32
    %c0_i32_1 = arith.constant 0 : i32
    return %c0_i32, %c0_i32_0 : i32, i32
  }
  func.func @transform_8(%arg0: i32) -> (i32, i32) {
    %c0_i32 = arith.constant 0 : i32
    %c0_i32_0 = arith.constant 0 : i32
    %c0_i32_1 = arith.constant 0 : i32
    return %c0_i32, %c0_i32_0 : i32, i32
  }
}

</mosaic_0001>

<bundles_post_ra>
// kernel: gat_forward.1
= control target key start
LH: loop header
LB: loop body
LE: loop exit
PB: predicated region body
PF: predicated region fallthrough
CT: control target
= control target key end

     0   :  { %v1260_v1 = vmov 0.0   ;;  %vm1261_vm0 = vmmov 0   ;;  %s1531_s0 = inlined_call_operand.vmem [shape: f32[8,128], index: 0, kind: input, shape index: {}]   ;;  %s1532_s1 = inlined_call_operand.vmem [shape: bf16[128,128], index: 1, kind: input, shape index: {}]   ;;  %s1533_s2 = inlined_call_operand.vmem [shape: bf16[128,8], index: 2, kind: input, shape index: {}]   ;;  %s1534_s3 = inlined_call_operand.vmem [shape: f32[1,32], index: 3, kind: input, shape index: {}]   ;;  %s1535_s4 = inlined_call_operand.vmem [shape: bf16[32,128], index: 4, kind: input, shape index: {}]   ;;  %s1536_s5 = inlined_call_operand.vmem [shape: bf16[128,4], index: 5, kind: input, shape index: {}]   ;;  %s1537_s6 = inlined_call_operand.vmem [shape: f32[1,8], index: 6, kind: input, shape index: {}]   ;;  %s1538_s7 = inlined_call_operand.vmem [shape: s8[8,8], index: 7, kind: input, shape index: {}]   ;;  %s1539_s8 = inlined_call_operand.hbm [shape: f32[8,128], index: 8, kind: output, shape index: {}]  }
   0x1   :  { %v1184_v0 = vld [vmem:[%s1532_s1] sm:$0xff]   ;;  %1056 = vmatprep.subr.bf16.mxu0 %v1260_v1  ;;  %1076 = vmatprep.subr.bf16.mxu1 %v1260_v1  ;;  %v1185_v2 = vld [vmem:[%s1532_s1 + $0x8] sm:$0xff]   ;;  %v1186_v3 = vld [vmem:[%s1532_s1 + $0x10] sm:$0xff]  }
   0x2   :  { %1057 = vmatpush3.bf16.msra.mxu0 %v1184_v0  ;;  %1072 = vmatprep.mubr.msk.bf16.mxu0 %vm1261_vm0, %v1260_v1  ;;  %v1192_v4 = vld [vmem:[%s1533_s2] sm:$0xff]   ;;  %v1187_v5 = vld [vmem:[%s1532_s1 + $0x18] sm:$0xff]   ;;  %v1193_v6 = vld [vmem:[%s1533_s2 + $0x8] sm:$0xff]  }
   0x3   :  { %1058 = vmatprep.subr.bf16.mxu0 %v1260_v1  ;;  %1092 = vmatprep.mubr.msk.bf16.mxu1 %vm1261_vm0, %v1260_v1  ;;  %v1188_v7 = vld [vmem:[%s1532_s1 + $0x20] sm:$0xff]   ;;  %v1194_v8 = vld [vmem:[%s1533_s2 + $0x10] sm:$0xff]   ;;  %v1189_v9 = vld [vmem:[%s1532_s1 + $0x28] sm:$0xff]  }
   0x4   :  { %1077 = vmatpush3.bf16.msra.mxu1 %v1192_v4  ;;  %v1195_v10 = vld [vmem:[%s1533_s2 + $0x18] sm:$0xff]   ;;  %v1190_v11 = vld [vmem:[%s1532_s1 + $0x30] sm:$0xff]  }
   0x5   :  { %1078 = vmatprep.subr.bf16.mxu1 %v1260_v1 }
   0x6   :  { %1059 = vmatpush3.bf16.msra.mxu0 %v1185_v2 }
   0x7   :  { %1060 = vmatprep.subr.bf16.mxu0 %v1260_v1 }
   0x8   :  { %1079 = vmatpush3.bf16.msra.mxu1 %v1193_v6 }
   0x9   :  { %1080 = vmatprep.subr.bf16.mxu1 %v1260_v1 }
   0xa   :  { %1061 = vmatpush3.bf16.msra.mxu0 %v1186_v3 }
   0xb   :  { %1062 = vmatprep.subr.bf16.mxu0 %v1260_v1 }
   0xc   :  { %1081 = vmatpush3.bf16.msra.mxu1 %v1194_v8 }
   0xd   :  { %1082 = vmatprep.subr.bf16.mxu1 %v1260_v1 }
   0xe   :  { %1063 = vmatpush3.bf16.msra.mxu0 %v1187_v5 }
   0xf   :  { %1064 = vmatprep.subr.bf16.mxu0 %v1260_v1 }
  0x12   :  { %1065 = vmatpush3.bf16.msra.mxu0 %v1188_v7 }
  0x13   :  { %1066 = vmatprep.subr.bf16.mxu0 %v1260_v1 }
  0x16   :  { %1067 = vmatpush3.bf16.msra.mxu0 %v1189_v9 }
  0x17   :  { %13 = vsyncpa [#allocation3], 0  ;;  %1068 = vmatprep.subr.bf16.mxu0 %v1260_v1  ;;  %1083 = vmatpush3.bf16.msra.mxu1 %v1195_v10  ;;  %v1196_v12 = vld [vmem:[%s1533_s2 + $0x20] sm:$0xff]   ;;  %v1191_v13 = vld [vmem:[%s1532_s1 + $0x38] sm:$0xff]   ;;  %v1262_v19 = vmov 6   ;;  %v1263_v20 = vmov 4   ;;  %v285_v33 = vlaneseq }
  0x18   :  { %1084 = vmatprep.subr.bf16.mxu1 %v1260_v1  ;;  %v36_v14 = vld [vmem:[%s1531_s0] sm:$0xff]  ;;  %v1197_v15 = vld [vmem:[%s1533_s2 + $0x28] sm:$0xff]   ;;  %v1198_v17 = vld [vmem:[%s1533_s2 + $0x30] sm:$0xff]   ;;  %1179 = vset.pattern.permute.xlu1 %v1262_v19  ;;  %vm308_vm1 = vcmask 1043456   ;;  %v1264_v31 = vmov 7   ;;  %v1265_v32 = vmov 5  }
  0x19   :  { %v70_v16 = vpack.c.bf16 %v36_v14, %v36_v14  ;;  %v1199_v18 = vld [vmem:[%s1533_s2 + $0x38] sm:$0xff]   ;;  %1177 = vset.pattern.permute.xlu0 %v1263_v20  ;;  %v31_v34 = vld [vmem:[%s1538_s7] sm:$0x3]  ;;  %v1408_v37 = vshrl.u32 %v285_v33, 7  ;;  %vm294_vm5 = vcmask 64512   ;;  %s1266_s7 = smov 120  }
  0x1a   :  { %1069 = vmatpush3.bf16.msra.mxu0 %v1190_v11  ;;  %v32_v36 = vunpack.c.0.s8 %v31_v34  ;;  %s1267_s16 = smov 112   ;;  %s1268_s17 = smov 104   ;;  %vm587_vm7 = vcmask 130048   ;;  %vm589_vm8 = vcmask 195584   ;;  %vm637_vm10 = vcmask 261120  }
  0x1b   :  { %1070 = vmatprep.subr.bf16.mxu0 %v1260_v1  ;;  %1085 = vmatpush3.bf16.msra.mxu1 %v1196_v12  ;;  %v287_v41 = vsub.s32 0, %v1408_v37  ;;  %v360_v42 = vsub.s32 1, %v1408_v37  ;;  %v434_v43 = vsub.s32 2, %v1408_v37  ;;  %v507_v44 = vsub.s32 3, %v1408_v37  ;;  %s1269_s18 = smov 8   ;;  %s1270_s19 = smov 16  }
  0x1c   :  { %1086 = vmatprep.subr.bf16.mxu1 %v1260_v1  ;;  %v33_v40 = vcvt.s32.f32 %v32_v36  ;;  %s1271_s20 = smov 24   ;;  %vm952_vm13 = vcmask 31744  }
  0x1e   :  { %1071 = vmatpush3.bf16.msra.mxu0 %v1191_v13  ;;  %v977_v46 = vadd.f32 -1.0, %v33_v40 }
  0x1f   :  { %1087 = vmatpush3.bf16.msra.mxu1 %v1197_v15  ;;  %1096 = vmatprep.subr.bf16.mxu0 %v1260_v1 }
  0x20   :  { %1088 = vmatprep.subr.bf16.mxu1 %v1260_v1  ;;  %v1418_v56 = vmul.f32 1e+30, %v977_v46 }
  0x21   :  { %1073 = vmatmul.mubr.bf16.vlgmr.msra.gmra.mrb[0].mxu0 %v70_v16 }
  0x22   :  { %1098 = vmatprep.mubr.msk.bf16.mxu0 %vm1261_vm0, %v1260_v1 }
  0x23   :  { %1089 = vmatpush3.bf16.msra.mxu1 %v1198_v17 }
  0x24   :  { %1090 = vmatprep.subr.bf16.mxu1 %v1260_v1 }
  0x27   :  { %1091 = vmatpush3.bf16.msra.mxu1 %v1199_v18 }
  0x28   :  { %1102 = vmatprep.subr.bf16.mxu1 %v1260_v1 }
  0xf4   :  { %v153_v21 = vpop.f32.mrb[0].mxu0 }
  0xf5   :  { %v1397_v22 = vpack.c.bf16 %v153_v21, %v153_v21  ;;  %v1074_v23 = vpop.f32.mrb[1].mxu0 }
  0xf6   :  { %v156_v24 = vpop.f32.mrb[2].mxu0 }
  0xf7   :  { %v1075_v25 = vpop.f32.mrb[3].mxu0  ;;  %1093 = vmatmul.mubr.bf16.vlgmr.msra.gmra.mrb[0].mxu1 %v1397_v22  ;;  %v310_v26 = vsel %vm308_vm1, %v1397_v22, 0 }
  0xf8   :  { %1097 = vmatpush3.bf16.msra.mxu0 %v310_v26  ;;  %1104 = vmatprep.mubr.msk.bf16.mxu1 %vm1261_vm0, %v1260_v1 }
  0xf9   :  { %1108 = vmatprep.subr.bf16.mxu0 %v1260_v1 }
 0x1ca   :  { %v242_v27 = vpop.f32.mrb[0].mxu1 }
 0x1cb   :  { %429 = vperm.xlu1 %1179, %v242_v27   ;;  %282 = vperm.xlu0 %1177, %v242_v27   ;;  %v1094_v28 = vpop.f32.mrb[1].mxu1 }
 0x1cc   :  { %v245_v29 = vpop.f32.mrb[2].mxu1 }
 0x1cd   :  { %v1095_v30 = vpop.f32.mrb[3].mxu1 }
 0x1cf   :  { %1180 = vset.pattern.permute.xlu1 %v1264_v31  ;;  %1178 = vset.pattern.permute.xlu0 %v1265_v32 }
 0x1d0   :  { %502 = vperm.xlu1 %1180, %v242_v27   ;;  %355 = vperm.xlu0 %1178, %v242_v27  }
 0x1f9   :  { %248 = vxpose.xlu1.b32.start.end [1/1] (short) (narrow) %v242_v27, 8 }
 0x24a   :  { %v430_v35 = vpop.permute.xlu1 %429  ;;  %v283_v38 = vpop.permute.xlu0 %282 }
 0x24f   :  { %v503_v39 = vpop.permute.xlu1 %502  ;;  %v356_v51 = vpop.permute.xlu0 %355 }
 0x279   :  { %v264_v45 = vpop.trf.xlu1 }
 0x27a   :  { %v288_v47 = vrot.slane %v264_v45, %v287_v41  ;;  %v361_v48 = vrot.slane %v264_v45, %v360_v42  ;;  %v435_v49 = vrot.slane %v264_v45, %v434_v43  ;;  %v508_v50 = vrot.slane %v264_v45, %v507_v44 }
 0x27c   :  { %v289_v52 = vadd.f32 %v288_v47, %v283_v38  ;;  %v362_v53 = vadd.f32 %v361_v48, %v356_v51  ;;  %v436_v54 = vadd.f32 %v435_v49, %v430_v35  ;;  %v509_v55 = vadd.f32 %v508_v50, %v503_v39 }
 0x27e   :  { %vm510_vm2 = vcmp.ge.f32.partialorder %v509_v55, 0.0  ;;  %v511_v57 = vmul.f32 0.2, %v509_v55  ;;  %vm290_vm3 = vcmp.ge.f32.partialorder %v289_v52, 0.0  ;;  %v291_v58 = vmul.f32 0.2, %v289_v52 }
 0x27f   :  { %vm363_vm4 = vcmp.ge.f32.partialorder %v362_v53, 0.0  ;;  %v364_v59 = vmul.f32 0.2, %v362_v53  ;;  %v438_v62 = vmul.f32 0.2, %v436_v54  ;;  %vm437_vm6 = vcmp.ge.f32.partialorder %v436_v54, 0.0 }
 0x280   :  { %v512_v60 = vsel %vm510_vm2, %v509_v55, %v511_v57  ;;  %v292_v61 = vsel %vm290_vm3, %v289_v52, %v291_v58 }
 0x281   :  { %v513_v63 = vadd.f32 %v512_v60, %v1418_v56  ;;  %v293_v0 = vadd.f32 %v292_v61, %v1418_v56  ;;  %v365_v2 = vsel %vm363_vm4, %v362_v53, %v364_v59  ;;  %v439_v6 = vsel %vm437_vm6, %v436_v54, %v438_v62 }
 0x282   :  { %v366_v5 = vadd.f32 %v365_v2, %v1418_v56  ;;  %v440_v8 = vadd.f32 %v439_v6, %v1418_v56  ;;  %v1200_v6 = vld [vmem:[%s1535_s4] sm:$0xff]  }
 0x283   :  { %v514_v3 = vsel %vm294_vm5, %v513_v63, -inf  ;;  %v295_v4 = vsel %vm294_vm5, %v293_v0, -inf }
 0x284   :  { %515 = vmax.xlane.f32.xlu1 %v514_v3  ;;  %296 = vmax.xlane.f32.xlu0 %v295_v4  ;;  %v367_v7 = vsel %vm294_vm5, %v366_v5, -inf  ;;  %v441_v9 = vsel %vm294_vm5, %v440_v8, -inf }
 0x288   :  { %368 = vmax.xlane.f32.xlu0 %v367_v7  ;;  %v1201_v7 = vld [vmem:[%s1535_s4 + $0x8] sm:$0xff]  }
 0x28c   :  { %442 = vmax.xlane.f32.xlu0 %v441_v9  ;;  %v1203_v9 = vld [vmem:[%s1536_s5 + $0x8] sm:$0xff]  }
 0x2a2   :  { %378 = vrot.lane.b32.xlu0 %v1397_v22, %s1266_s7 }
 0x2a6   :  { %451 = vrot.lane.b32.xlu0 %v1397_v22, %s1267_s16 }
 0x2aa   :  { %524 = vrot.lane.b32.xlu0 %v1397_v22, %s1268_s17 }
 0x311   :  { %v297_v10 = vpop.xlane.xlu0 %296  ;;  %v516_v13 = vpop.xlane.xlu1 %515 }
 0x312   :  { %v298_v11 = vsub.f32 %v293_v0, %v297_v10  ;;  %v517_v16 = vsub.f32 %v513_v63, %v516_v13  ;;  %v1204_v10 = vld [vmem:[%s1536_s5 + $0x10] sm:$0xff]   ;;  %v1207_v13 = vld [vmem:[%s1536_s5 + $0x28] sm:$0xff]  }
 0x314   :  { %v299_v12 = vmul.f32 1.442695, %v298_v11  ;;  %v518_v20 = vmul.f32 1.442695, %v517_v16  ;;  %v1205_v11 = vld [vmem:[%s1536_s5 + $0x18] sm:$0xff]  }
 0x315   :  { %v369_v14 = vpop.xlane.xlu0 %368 }
 0x316   :  { %v370_v15 = vsub.f32 %v366_v5, %v369_v14  ;;  %1210 = vpow2.f32 %v299_v12  ;;  %v1206_v12 = vld [vmem:[%s1536_s5 + $0x20] sm:$0xff]   ;;  %v1208_v14 = vld [vmem:[%s1536_s5 + $0x30] sm:$0xff]  }
 0x318   :  { %v371_v17 = vmul.f32 1.442695, %v370_v15 }
 0x319   :  { %v443_v18 = vpop.xlane.xlu0 %442 }
 0x31a   :  { %1212 = vpow2.f32 %v371_v17  ;;  %v444_v19 = vsub.f32 %v440_v8, %v443_v18  ;;  %v1202_v8 = vld [vmem:[%s1536_s5] sm:$0xff]  }
 0x31c   :  { %v445_v21 = vmul.f32 1.442695, %v444_v19 }
 0x31d   :  { %v379_v23 = vpop.permute.xlu0 %378 }
 0x31e   :  { %1214 = vpow2.f32 %v445_v21  ;;  %v384_v24 = vsel %vm308_vm1, %v379_v23, 0  ;;  %v998_v21 = vld [vmem:[%s1534_s3] ss:$0 sm:$0xff]  ;;  %s1274_s3 = smov 124  }
 0x31f   :  { %1103 = vmatpush3.bf16.msra.mxu1 %v384_v24  ;;  %1216 = vpow2.f32 %v518_v20 }
 0x320   :  { %1114 = vmatprep.subr.bf16.mxu1 %v1260_v1  ;;  %v1211_v22 = vpop.eup %1210 }
 0x321   :  { %v452_v25 = vpop.permute.xlu0 %451  ;;  %v304_v27 = vpack.c.bf16 %v1211_v22, %v1211_v22  ;;  %v301_v40 = vsel %vm294_vm5, %v1211_v22, 0.0 }
 0x322   :  { %v457_v26 = vsel %vm308_vm1, %v452_v25, 0 }
 0x323   :  { %1099 = vmatmul.mubr.msk.bf16.vlgmr.msra.gmra.mrb[4].mxu0 %vm294_vm5, %v304_v27 }
 0x324   :  { %v1213_v28 = vpop.eup %1212  ;;  %1109 = vmatpush3.bf16.msra.mxu0 %v457_v26  ;;  %1110 = vmatprep.mubr.msk.bf16.mxu0 %vm1261_vm0, %v1260_v1 }
 0x325   :  { %v525_v29 = vpop.permute.xlu0 %524  ;;  %v373_v30 = vsel %vm294_vm5, %v1213_v28, 0.0  ;;  %v376_v31 = vpack.c.bf16 %v1213_v28, %v1213_v28  ;;  %1120 = vmatprep.subr.bf16.mxu0 %v1260_v1 }
 0x326   :  { %v530_v32 = vsel %vm308_vm1, %v525_v29, 0  ;;  %374 = vadd.xlane.f32.xlu0 %v373_v30 }
 0x327   :  { %1105 = vmatmul.mubr.msk.bf16.vlgmr.msra.gmra.mrb[4].mxu1 %vm294_vm5, %v376_v31  ;;  %v1209_v31 = vld [vmem:[%s1536_s5 + $0x38] sm:$0xff]   ;;  %s1275_s5 = smov 4  }
 0x328   :  { %v1215_v33 = vpop.eup %1214  ;;  %1115 = vmatpush3.bf16.msra.mxu1 %v530_v32  ;;  %1116 = vmatprep.mubr.msk.bf16.mxu1 %vm1261_vm0, %v1260_v1  ;;  %v1272_v32 = vmov 2  }
 0x329   :  { %v447_v34 = vsel %vm294_vm5, %v1215_v33, 0.0  ;;  %v450_v35 = vpack.c.bf16 %v1215_v33, %v1215_v33  ;;  %1128 = vmatprep.subr.bf16.mxu1 %v1260_v1  ;;  %v1217_v36 = vpop.eup %1216  ;;  %1181 = vset.pattern.permute.xlu1 %v1272_v32 }
 0x32a   :  { %448 = vadd.xlane.f32.xlu1 %v447_v34  ;;  %v520_v38 = vsel %vm294_vm5, %v1217_v36, 0.0  ;;  %v523_v39 = vpack.c.bf16 %v1217_v36, %v1217_v36 }
 0x32b   :  { %1111 = vmatmul.mubr.msk.bf16.vlgmr.msra.gmra.mrb[8].mxu0 %vm294_vm5, %v450_v35 }
 0x32c   :  { %1124 = vmatprep.mubr.msk.bf16.mxu0 %vm1261_vm0, %v1260_v1  ;;  %1121 = vmatpush3.bf16.msra.mxu0 %v1200_v6 }
 0x32d   :  { %1122 = vmatprep.subr.bf16.mxu0 %v1260_v1 }
 0x32e   :  { %521 = vadd.xlane.f32.xlu1 %v520_v38 }
 0x32f   :  { %1117 = vmatmul.mubr.msk.bf16.vlgmr.msra.gmra.mrb[8].mxu1 %vm294_vm5, %v523_v39 }
 0x330   :  { %1144 = vmatprep.mubr.msk.bf16.mxu1 %vm1261_vm0, %v1260_v1  ;;  %1123 = vmatpush3.bf16.msra.mxu0 %v1201_v7 }
 0x331   :  { %1148 = vmatprep.subr.bf16.mxu0 %v1260_v1  ;;  %1129 = vmatpush3.bf16.msra.mxu1 %v1202_v8 }
 0x332   :  { %302 = vadd.xlane.f32.xlu1 %v301_v40  ;;  %1130 = vmatprep.subr.bf16.mxu1 %v1260_v1  ;;  %v1273_v40 = vmov 3  }
 0x333   :  { %1183 = vset.pattern.permute.xlu0 %v1273_v40 }
 0x335   :  { %1131 = vmatpush3.bf16.msra.mxu1 %v1203_v9 }
 0x336   :  { %1132 = vmatprep.subr.bf16.mxu1 %v1260_v1 }
 0x339   :  { %1133 = vmatpush3.bf16.msra.mxu1 %v1204_v10 }
 0x33a   :  { %1134 = vmatprep.subr.bf16.mxu1 %v1260_v1 }
 0x33d   :  { %1135 = vmatpush3.bf16.msra.mxu1 %v1205_v11 }
 0x33e   :  { %1136 = vmatprep.subr.bf16.mxu1 %v1260_v1 }
 0x341   :  { %1137 = vmatpush3.bf16.msra.mxu1 %v1206_v12 }
 0x342   :  { %1138 = vmatprep.subr.bf16.mxu1 %v1260_v1 }
 0x345   :  { %1139 = vmatpush3.bf16.msra.mxu1 %v1207_v13 }
 0x346   :  { %1140 = vmatprep.subr.bf16.mxu1 %v1260_v1 }
 0x349   :  { %1141 = vmatpush3.bf16.msra.mxu1 %v1208_v14 }
 0x34a   :  { %1142 = vmatprep.subr.bf16.mxu1 %v1260_v1 }
 0x34d   :  { %1143 = vmatpush3.bf16.msra.mxu1 %v1209_v31 }
 0x3b3   :  { %v375_v43 = vpop.xlane.xlu0 %374 }
 0x3b4   :  { %1218 = vrcp.f32 %v375_v43 }
 0x3b7   :  { %v449_v44 = vpop.xlane.xlu1 %448 }
 0x3b8   :  { %1220 = vrcp.f32 %v449_v44 }
 0x3bb   :  { %v522_v45 = vpop.xlane.xlu1 %521 }
 0x3bc   :  { %1222 = vrcp.f32 %v522_v45 }
 0x3be   :  { %v1219_v49 = vpop.eup %1218 }
 0x3bf   :  { %v303_v15 = vpop.xlane.xlu1 %302 }
 0x3c0   :  { %1224 = vrcp.f32 %v303_v15 }
 0x3c2   :  { %v1221_v57 = vpop.eup %1220 }
 0x3c6   :  { %v1223_v62 = vpop.eup %1222 }
 0x3ca   :  { %v1225_v16 = vpop.eup %1224 }
 0x3f6   :  { %v346_v46 = vpop.f32.mrb[4].mxu0 }
 0x3f7   :  { %v1100_v47 = vpop.f32.mrb[5].mxu0  ;;  %v353_v18 = vmul.f32 %v1225_v16, %v346_v46 }
 0x3f8   :  { %v349_v48 = vpop.f32.mrb[6].mxu0 }
 0x3f9   :  { %v1101_v50 = vpop.f32.mrb[7].mxu0 }
 0x3fa   :  { %v420_v51 = vpop.f32.mrb[4].mxu1 }
 0x3fb   :  { %v427_v52 = vmul.f32 %v1219_v49, %v420_v51  ;;  %v1106_v53 = vpop.f32.mrb[5].mxu1 }
 0x3fc   :  { %v423_v54 = vpop.f32.mrb[6].mxu1 }
 0x3fd   :  { %v1107_v55 = vpop.f32.mrb[7].mxu1  ;;  %575 = vrot.lane.b32.xlu1 %v427_v52, %s1269_s18  ;;  %s1276_s18 = smov [#allocation2]  }
 0x3fe   :  { %v493_v58 = vpop.f32.mrb[8].mxu0 }
 0x3ff   :  { %v500_v59 = vmul.f32 %v1221_v57, %v493_v58  ;;  %v1112_v60 = vpop.f32.mrb[9].mxu0 }
 0x400   :  { %v496_v61 = vpop.f32.mrb[10].mxu0 }
 0x401   :  { %579 = vrot.lane.b32.xlu0 %v500_v59, %s1270_s19  ;;  %v1113_v63 = vpop.f32.mrb[11].mxu0  ;;  %s969_s19 = sshll.u32 %s1276_s18, 4  ;;  %s970_s19 = int_to_ptr.vmem [resolvable:$true] %s969_s19 }
 0x402   :  { %v566_v0 = vpop.f32.mrb[8].mxu1  ;;  %p1241_p1 = scmp.lt.s32.totalorder %s970_s19, %s970_s19 }
 0x403   :  { %v573_v2 = vmul.f32 %v1223_v62, %v566_v0  ;;  %v1118_v3 = vpop.f32.mrb[9].mxu1 }
 0x404   :  { %v569_v4 = vpop.f32.mrb[10].mxu1 }
 0x405   :  { %v1119_v5 = vpop.f32.mrb[11].mxu1  ;;  %583 = vrot.lane.b32.xlu1 %v573_v2, %s1271_s20  ;;  %s1236_s20 = scalar_lea.vmem %s970_s19, 128 }
 0x406   :  { %p1237_p0 = scmp.ne.s32.totalorder %s970_s19, %s1236_s20  ;;  %p1242_p2 = scmp.lt.s32.totalorder %s1236_s20, %s1236_s20 }
 0x408   :  { %p1243_p3 = por %p1242_p2, %p1241_p1 }
 0x40a   :  { %p1244_p4 = pnand %p1243_p3, %p1237_p0 }
 0x46f   :  { %v576_v17 = vpop.permute.xlu1 %575 }
 0x470   :  { %v586_v20 = vsel %vm294_vm5, %v353_v18, %v576_v17 }
 0x473   :  { %v580_v19 = vpop.permute.xlu0 %579 }
 0x474   :  { %v588_v23 = vsel %vm587_vm7, %v586_v20, %v580_v19 }
 0x477   :  { %v584_v24 = vpop.permute.xlu1 %583 }
 0x478   :  { %v590_v22 = vsel %vm589_vm8, %v588_v23, %v584_v24  ;;  %v1013_v24 = vld [vmem:[%s1537_s6] ss:$0 sm:$0xff] }
 0x479   :  { %v597_v25 = vadd.f32 %v998_v21, %v590_v22 }
 0x47b   :  { %v599_v26 = vmul.f32 1.442695, %v597_v25  ;;  %vm598_vm9 = vcmp.gt.f32.partialorder %v597_v25, 0.0 }
 0x47d   :  { %1226 = vpow2.f32 %v599_v26 }
 0x487   :  { %v1227_v27 = vpop.eup %1226 }
 0x488   :  { %v999_v28 = vadd.f32 -1.0, %v1227_v27 }
 0x48a   :  { %v602_v29 = vsel %vm598_vm9, %v597_v25, %v999_v28 }
 0x48b   :  { %v624_v30 = vpack.c.bf16 %v602_v29, %v602_v29 }
 0x48d   :  { %1125 = vmatmul.mubr.msk.bf16.vlgmr.msra.gmra.mrb[12].mxu0 %vm637_vm10, %v624_v30 }
 0x48e   :  { %1150 = vmatprep.mubr.msk.bf16.mxu0 %vm1261_vm0, %v1260_v1 }
 0x560   :  { %v675_v33 = vpop.f32.mrb[12].mxu0 }
 0x561   :  { %v681_v34 = vpack.c.bf16 %v675_v33, %v675_v33  ;;  %v1126_v35 = vpop.f32.mrb[13].mxu0 }
 0x562   :  { %v678_v36 = vpop.f32.mrb[14].mxu0 }
 0x563   :  { %v1127_v38 = vpop.f32.mrb[15].mxu0  ;;  %1145 = vmatmul.mubr.bf16.vlgmr.msra.gmra.mrb[12].mxu1 %v681_v34  ;;  %v830_v39 = vsel %vm308_vm1, %v681_v34, 0 }
 0x564   :  { %1149 = vmatpush3.bf16.msra.mxu0 %v830_v39 }
 0x565   :  { %1154 = vmatprep.subr.bf16.mxu0 %v1260_v1 }
 0x636   :  { %v764_v43 = vpop.f32.mrb[12].mxu1 }
 0x637   :  { %804 = vperm.xlu1 %1181, %v764_v43   ;;  %v1146_v44 = vpop.f32.mrb[13].mxu1 }
 0x638   :  { %v767_v45 = vpop.f32.mrb[14].mxu1 }
 0x639   :  { %v1147_v46 = vpop.f32.mrb[15].mxu1 }
 0x63b   :  { %1182 = vset.pattern.permute.xlu1 %v1273_v40 }
 0x63c   :  { %875 = vperm.xlu1 %1182, %v764_v43  }
 0x665   :  { %770 = vxpose.xlu1.b32.start.end [1/1] (short) (narrow) %v764_v43, 8 }
 0x6b6   :  { %v805_v47 = vpop.permute.xlu1 %804 }
 0x6bb   :  { %v876_v48 = vpop.permute.xlu1 %875 }
 0x6e5   :  { %v786_v49 = vpop.trf.xlu1 }
 0x6e6   :  { %v810_v50 = vrot.slane %v786_v49, %v287_v41  ;;  %v881_v51 = vrot.slane %v786_v49, %v360_v42 }
 0x6e8   :  { %v811_v52 = vadd.f32 %v810_v50, %v805_v47  ;;  %v882_v53 = vadd.f32 %v881_v51, %v876_v48 }
 0x6ea   :  { %vm812_vm11 = vcmp.ge.f32.partialorder %v811_v52, 0.0  ;;  %v813_v54 = vmul.f32 0.2, %v811_v52  ;;  %vm883_vm12 = vcmp.ge.f32.partialorder %v882_v53, 0.0  ;;  %v884_v55 = vmul.f32 0.2, %v882_v53 }
 0x6ec   :  { %v814_v57 = vsel %vm812_vm11, %v811_v52, %v813_v54  ;;  %v885_v58 = vsel %vm883_vm12, %v882_v53, %v884_v55 }
 0x6ed   :  { %v815_v59 = vadd.f32 %v814_v57, %v1418_v56  ;;  %v886_v61 = vadd.f32 %v885_v58, %v1418_v56 }
 0x6ef   :  { %v816_v60 = vsel %vm294_vm5, %v815_v59, -inf  ;;  %v887_v41 = vsel %vm294_vm5, %v886_v61, -inf }
 0x6f0   :  { %817 = vmax.xlane.f32.xlu0 %v816_v60 }
 0x6f4   :  { %888 = vmax.xlane.f32.xlu0 %v887_v41 }
 0x70a   :  { %898 = vrot.lane.b32.xlu0 %v681_v34, %s1274_s3 }
 0x77d   :  { %v818_v37 = vpop.xlane.xlu0 %817 }
 0x77e   :  { %v819_v42 = vsub.f32 %v815_v59, %v818_v37 }
 0x780   :  { %v820_v62 = vmul.f32 1.442695, %v819_v42 }
 0x781   :  { %v889_v63 = vpop.xlane.xlu0 %888 }
 0x782   :  { %1228 = vpow2.f32 %v820_v62  ;;  %v890_v0 = vsub.f32 %v886_v61, %v889_v63 }
 0x784   :  { %v891_v2 = vmul.f32 1.442695, %v890_v0 }
 0x785   :  { %v899_v4 = vpop.permute.xlu0 %898 }
 0x786   :  { %1230 = vpow2.f32 %v891_v2  ;;  %v904_v56 = vsel %vm308_vm1, %v899_v4, 0 }
 0x78c   :  { %v1229_v3 = vpop.eup %1228 }
 0x78d   :  { %v822_v5 = vsel %vm294_vm5, %v1229_v3, 0.0  ;;  %v825_v6 = vpack.c.bf16 %v1229_v3, %v1229_v3 }
 0x78e   :  { %823 = vadd.xlane.f32.xlu0 %v822_v5 }
 0x78f   :  { %1151 = vmatmul.mubr.msk.bf16.vlgmr.msra.gmra.mrb[16].mxu0 %vm294_vm5, %v825_v6 }
 0x790   :  { %v1231_v7 = vpop.eup %1230  ;;  %1155 = vmatpush3.bf16.msra.mxu0 %v904_v56  ;;  %1156 = vmatprep.mubr.msk.bf16.mxu0 %vm1261_vm0, %v1260_v1 }
 0x791   :  { %v893_v8 = vsel %vm294_vm5, %v1231_v7, 0.0  ;;  %v896_v9 = vpack.c.bf16 %v1231_v7, %v1231_v7 }
 0x792   :  { %894 = vadd.xlane.f32.xlu1 %v893_v8 }
 0x797   :  { %1157 = vmatmul.mubr.msk.bf16.vlgmr.msra.gmra.mrb[20].mxu0 %vm294_vm5, %v896_v9 }
 0x81b   :  { %v824_v20 = vpop.xlane.xlu0 %823 }
 0x81f   :  { %v895_v10 = vpop.xlane.xlu1 %894 }
 0x820   :  { %1232 = vrcp.f32 %v895_v10 }
 0x821   :  { %1234 = vrcp.f32 %v824_v20 }
 0x82a   :  { %v1233_v15 = vpop.eup %1232 }
 0x82b   :  { %v1235_v21 = vpop.eup %1234 }
 0x862   :  { %v866_v11 = vpop.f32.mrb[16].mxu0 }
 0x863   :  { %v1152_v12 = vpop.f32.mrb[17].mxu0  ;;  %v873_v23 = vmul.f32 %v1235_v21, %v866_v11 }
 0x864   :  { %v869_v13 = vpop.f32.mrb[18].mxu0 }
 0x865   :  { %v1153_v14 = vpop.f32.mrb[19].mxu0 }
 0x86a   :  { %v940_v16 = vpop.f32.mrb[20].mxu0 }
 0x86b   :  { %v947_v17 = vmul.f32 %v1233_v15, %v940_v16  ;;  %v1158_v18 = vpop.f32.mrb[21].mxu0 }
 0x86c   :  { %v943_v19 = vpop.f32.mrb[22].mxu0 }
 0x86d   :  { %949 = vrot.lane.b32.xlu1 %v947_v17, %s1275_s5  ;;  %v1159_v1 = vpop.f32.mrb[23].mxu0 }
 0x8df   :  { %v950_v22 = vpop.permute.xlu1 %949 }
 0x8e0   :  { %v953_v25 = vsel %vm952_vm13, %v873_v23, %v950_v22 }
 0x8e1   :  { %v960_v26 = vadd.f32 %v1013_v24, %v953_v25 }
 0x8e3   :  { %v961_v27 = vsel %vm294_vm5, %v960_v26, 0.0 }
 0x8e4   :  { %962 = vst [vmem:[#allocation2] sm:$0xff] %v961_v27 }
 0x8e5   :  { %1247 = shalt.err (!%p1244_p4)
}
 0x8e6   :  { %s1248_s6 = scalar_lea.hbm %s1539_s8, 128 }
 0x8e7   :  { %p1249_p5 = scmp.ne.s32.totalorder %s1539_s8, %s1248_s6  ;;  %p1252_p6 = scmp.lt.u32.totalorder %s1248_s6, %s1539_s8 }
 0x8e9   :  { %p1254_p7 = pnand %p1252_p6, %p1249_p5 }
 0x8eb   :  { %1257 = shalt.err (!%p1254_p7)
}
 0x8ec   :  { %972 = dma.vmem_to_hbm [thread:$0]  %s970_s19, 128, %s1539_s8, [#allocation3]  }
 0x8ed   :  { %1258 = dma.done.wait [#allocation3], 128  }
 0x8ee   :  { %1259 = vsyncadd [#allocation3], 4294967168 }
 0x8ef   :  { %976 = vsyncpa [#allocation3], 1 }

</bundles_post_ra>
